<compile_context>
chip_gen: v7x
topology: tpu7x:2x2x1
jax: 0.10.0
libtpu: 0.0.40
codegen_flags: <defaults>
</compile_context>

<pallas_src>
import functools

import numpy as np

import jax
import jax.numpy as jnp
from jax import lax
from jax.experimental import pallas as pl
from jax.experimental.pallas import tpu as pltpu


_LN2 = 0.6931471805599453


# ----------------------------- Pallas kernel ------------------------------ #

def _cost_kernel(seglen_ref, x_ref, inst_ref, tsum_ref, c_ref,
                 lin_acc, num_acc, xsum_acc, sp_acc,
                 *, m_pad, tile_n, cost_mask_w, cost_dice_w):
    """Accumulates folded sigmoid-CE and dice cost terms over point tiles."""
    # NOTE: keep every pl.program_id / pl.num_programs call at the top level of
    # the kernel (never inside a pl.when body) so the primitive is not trapped
    # inside a nested cond jaxpr (breaks the interpret/CPU lowering path).
    b = pl.program_id(0)
    k = pl.program_id(1)
    nk = pl.num_programs(1)
    n_valid = seglen_ref[b]                         # true segment length (SMEM)

    @pl.when(k == 0)
    def _init():
        lin_acc[...] = jnp.zeros_like(lin_acc)
        num_acc[...] = jnp.zeros_like(num_acc)
        xsum_acc[...] = jnp.zeros_like(xsum_acc)
        sp_acc[...] = jnp.zeros_like(sp_acc)

    @pl.when(k * tile_n < n_valid)                  # skip fully padded tiles
    def _accumulate():
        x_b = x_ref[...]                            # [Q_pad, tn] bf16 mask logits
        x = x_b.astype(jnp.float32)
        inst = inst_ref[...]                        # [1, tn]     int32 (-1 = pad)

        # Streamed one-hot target tile, built once in bf16 (exact: values 0/1);
        # never read T from HBM and never materialise it in f32.
        iota_m = lax.broadcasted_iota(jnp.int32, (m_pad, tile_n), 0)
        t_bf16 = (iota_m == inst).astype(jnp.bfloat16)

        # softplus(x) = BCE(x, 0); sigmoid reuses exp(-|x|) (one EUP exp).
        e = jnp.exp(-jnp.abs(x))
        softplus_x = jnp.log(1.0 + e) + jnp.maximum(x, 0.0)
        sig = jnp.where(x >= 0.0, 1.0, e) / (1.0 + e)

        # hi/lo bf16 split of sigmoid: two native bf16 MXU passes give ~f32
        # accuracy for the dice numerator without an f32 one-hot / f32 matmul.
        sig_hi = sig.astype(jnp.bfloat16)
        sig_lo = (sig - sig_hi.astype(jnp.float32)).astype(jnp.bfloat16)

        def contract(a, t):
            # [A, tn] x [B, tn] -> [A, B], contracting the point axis on the MXU.
            return lax.dot_general(a, t, (((1,), (1,)), ((), ())),
                                   preferred_element_type=jnp.float32)

        # CE folded: pos@T' + neg@(1-T)' == rowsum(softplus(x)) - x@T'
        # (sign flipped for free in the epilogue -> no per-tile negate).
        lin_acc[...] += contract(x_b, t_bf16)
        num_acc[...] += contract(sig_hi, t_bf16) + contract(sig_lo, t_bf16)

        # Padded columns hold x == 0 exactly: each one adds exactly 0.5 to the
        # sigmoid row sum and ln2 to the softplus row sum, and contributes 0 to
        # both matmuls (one-hot is all-zero there) -> scalar correction, no
        # full-width mask multiplies.
        pad_f = (tile_n - jnp.clip(n_valid - k * tile_n, 0, tile_n)
                 ).astype(jnp.float32)
        xsum_acc[...] += jnp.sum(sig, axis=1, keepdims=True) - 0.5 * pad_f
        sp_acc[...] += jnp.sum(softplus_x, axis=1, keepdims=True) - _LN2 * pad_f

    @pl.when(k == nk - 1)
    def _finalize():
        n_pts = jnp.maximum(n_valid, 1).astype(jnp.float32)     # guard len==0
        ce = (sp_acc[...] - lin_acc[...]) / n_pts               # [Q,1]-[Q,M]
        numerator = 2.0 * num_acc[...]
        denominator = xsum_acc[...] + tsum_ref[...]             # [Q,1]+[1,M]
        dice = 1.0 - (numerator + 1.0) / (denominator + 1.0)
        c_ref[...] = cost_mask_w * ce + cost_dice_w * dice


def cost_matrices(seg_len, x_all, inst_all, tsum_all, *,
                  cost_mask_w=1.0, cost_dice_w=1.0, tile_n=1024):
    """Fused per-segment cost matrices.

    seg_len : [S] int32 true segment lengths (scalar-prefetched to SMEM)
    x_all   : [S, Q_pad, N_pad] bf16 mask logits (zero padded)
    inst_all: [S, 1, N_pad] int32 instance ids (-1 on padded points)
    tsum_all: [S, 1, M_pad] f32 per-instance point counts
    returns : [S, Q_pad, M_pad] f32 cost matrices (lane-dense, slice afterwards)
    """
    s, q_pad, n_pad = x_all.shape
    m_pad = tsum_all.shape[-1]
    assert n_pad % tile_n == 0 and m_pad % 128 == 0 and q_pad % 8 == 0

    kernel = functools.partial(
        _cost_kernel, m_pad=m_pad, tile_n=tile_n,
        cost_mask_w=float(cost_mask_w), cost_dice_w=float(cost_dice_w))

    return pl.pallas_call(
        kernel,
        out_shape=jax.ShapeDtypeStruct((s, q_pad, m_pad), jnp.float32),
        grid_spec=pltpu.PrefetchScalarGridSpec(
            num_scalar_prefetch=1,
            grid=(s, n_pad // tile_n),
            in_specs=[
                pl.BlockSpec((None, q_pad, tile_n), lambda b, k, sl: (b, 0, k)),
                pl.BlockSpec((None, 1, tile_n), lambda b, k, sl: (b, 0, k)),
                pl.BlockSpec((None, 1, m_pad), lambda b, k, sl: (b, 0, 0)),
            ],
            out_specs=pl.BlockSpec((None, q_pad, m_pad),
                                   lambda b, k, sl: (b, 0, 0)),
            scratch_shapes=[
                pltpu.VMEM((q_pad, m_pad), jnp.float32),   # x@T' accumulator
                pltpu.VMEM((q_pad, m_pad), jnp.float32),   # sigmoid@T' accumulator
                pltpu.VMEM((q_pad, 1), jnp.float32),       # rowsum(sigmoid)
                pltpu.VMEM((q_pad, 1), jnp.float32),       # rowsum(softplus)
            ],
        ),
        compiler_params=pltpu.CompilerParams(
            dimension_semantics=("parallel", "arbitrary"),
            vmem_limit_bytes=32 * 1024 * 1024,   # safe on v5e/v6e/v7x
        ),
    )(seg_len, x_all, inst_all, tsum_all)


# -------------------------- assignment (host glue) ------------------------- #

try:
    from scipy.optimize import linear_sum_assignment as _linear_sum_assignment
except Exception:                                   # pragma: no cover
    _linear_sum_assignment = None


def _greedy_assignment_np(c):
    """Pure-numpy greedy 1-to-1 assignment (no device syncs)."""
    c = np.array(c, dtype=np.float64, copy=True)
    q, m = c.shape
    n = min(q, m)
    rows, cols = [], []
    for _ in range(n):
        r, col = np.unravel_index(int(np.argmin(c)), c.shape)
        rows.append(int(r))
        cols.append(int(col))
        c[r, :] = np.inf
        c[:, col] = np.inf
    order = np.argsort(rows, kind="stable")
    return np.asarray(rows, np.int64)[order], np.asarray(cols, np.int64)[order]


def _assign(c_np):
    if _linear_sum_assignment is not None:
        r, cidx = _linear_sum_assignment(c_np)
        return np.asarray(r, np.int64), np.asarray(cidx, np.int64)
    # TODO(synk): the Hungarian solver (scipy.linear_sum_assignment) has no Pallas
    # equivalent; when scipy is unavailable fall back to a host-side greedy matcher.
    return _greedy_assignment_np(c_np)


# ------------------------------ the matcher -------------------------------- #

def _round_up(x, m):
    return ((x + m - 1) // m) * m


class HungarianMatcherPallas:
    def __init__(self, cost_class=1.0, cost_mask=1.0, cost_dice=1.0, num_points=0):
        assert cost_class != 0 or cost_mask != 0 or cost_dice != 0, "all costs cant be 0"
        # NOTE: cost_class is stored but unused, exactly like the PyTorch
        # my_optimized_forward path this mirrors (only cost_mask/cost_dice enter C).
        self.cost_class = cost_class
        self.cost_mask = cost_mask
        self.cost_dice = cost_dice
        self.num_points = num_points

    def forward(self, outputs, targets, offset):
        """outputs['outputs_mask']: [N_total, Q] logits; targets['instance']: [N_total] int."""
        outputs_mask = outputs["outputs_mask"]
        instance = targets["instance"]
        n_total, q = outputs_mask.shape

        # ---- host-side segment metadata (one device->host transfer) ----
        inst_np = np.asarray(jax.device_get(instance)).astype(np.int64)
        ends = np.asarray([int(e) for e in offset], dtype=np.int64)
        starts = np.concatenate([np.zeros((1,), np.int64), ends[:-1]])
        seg_lens = ends - starts
        n_seg = len(ends)
        # F.one_hot semantics: num_classes = max(id) + 1 (per segment).
        # Instance ids are assumed non-negative (F.one_hot would fail otherwise).
        num_insts = [int(inst_np[s:e].max()) + 1 for s, e in zip(starts, ends)]

        q_pad = _round_up(q, 16)                     # bf16 packs 16 sublanes/vreg
        m_pad = _round_up(max(num_insts), 128)       # lane-dense output width
        n_max = int(seg_lens.max())

        # Point tile: as big as a conservative per-column VMEM budget allows.
        col_bytes = 20 * q_pad + 8 * m_pad           # rough per-column working set
        tile_cap = max(128, ((16 << 20) // col_bytes) // 128 * 128)
        tile_n = min(8192, tile_cap, _round_up(n_max, 128))
        n_pad = _round_up(n_max, tile_n)

        # ---- host-built padded instance ids + per-instance point counts ----
        inst_pad = np.full((n_seg, 1, n_pad), -1, dtype=np.int32)   # -1 = pad
        tsum = np.zeros((n_seg, 1, m_pad), dtype=np.float32)
        for i, (s, e) in enumerate(zip(starts, ends)):
            seg = inst_np[s:e]
            inst_pad[i, 0, : e - s] = seg
            tsum[i, 0, :] = np.bincount(seg, minlength=m_pad)[:m_pad]

        # ---- device-side prep: one transpose+cast, one gather, one pad ----
        xT = outputs_mask.T.astype(jnp.bfloat16)                    # [Q, N_total]
        col = starts[:, None] + np.arange(n_pad)[None, :]           # [S, N_pad]
        valid = col < ends[:, None]
        col = np.where(valid, col, 0).astype(np.int32)
        x_all = jnp.take(xT, jnp.asarray(col), axis=1)              # [Q, S, N_pad]
        x_all = jnp.where(jnp.asarray(valid)[None, :, :], x_all, 0)  # exact 0 pads
        x_all = jnp.transpose(x_all, (1, 0, 2))                     # [S, Q, N_pad]
        x_all = jnp.pad(x_all, ((0, 0), (0, q_pad - q), (0, 0)))

        c_all = cost_matrices(jnp.asarray(seg_lens, jnp.int32),
                              x_all, jnp.asarray(inst_pad), jnp.asarray(tsum),
                              cost_mask_w=self.cost_mask,
                              cost_dice_w=self.cost_dice,
                              tile_n=tile_n)

        # Single device->host transfer, then solve every assignment on the host.
        c_host = np.asarray(jax.device_get(c_all))
        cost_mats, indices = [], []
        for i in range(n_seg):
            c_i = c_host[i, :q, :num_insts[i]]
            cost_mats.append(c_all[i, :q, :num_insts[i]])
            indices.append(_assign(c_i))

        matched_outputs, matched_targets = [], []
        for i, (s, e) in enumerate(zip(starts, ends)):
            pred_ids, tgt_ids = indices[i]
            matched_outputs.append(outputs_mask[s:e][:, pred_ids])
            # Equivalent to one_hot(instance)[:, tgt_ids].argmax(-1):
            # tgt_ids are unique, ids not in tgt_ids map to 0 (argmax default).
            lookup = np.zeros((num_insts[i],), dtype=np.int64)
            lookup[np.asarray(tgt_ids)] = np.arange(len(tgt_ids))
            matched_targets.append(jnp.asarray(lookup[inst_np[s:e]]))

        return matched_outputs, matched_targets, indices, cost_mats

    __call__ = forward


# ------------------------------- reference --------------------------------- #

def _ref_cost(x, t, cm, cd):
    """Plain-JAX reference matching batch_sigmoid_ce_loss + batch_dice_loss."""
    sig = jax.nn.sigmoid(x)
    num = 2.0 * sig @ t.T
    den = sig.sum(-1)[:, None] + t.sum(-1)[None, :]
    dice = 1.0 - (num + 1.0) / (den + 1.0)
    pos = jnp.logaddexp(0.0, -x)   # BCE(x, 1)
    neg = jnp.logaddexp(0.0, x)    # BCE(x, 0)
    ce = (pos @ t.T + neg @ (1.0 - t).T) / x.shape[1]
    return cm * ce + cd * dice


# --------------------------------- main ------------------------------------ #

if __name__ == "__main__":
    key = jax.random.PRNGKey(0)

    n_total = 512          # total number of points
    num_queries = 16       # Q
    num_instances = 8      # instance ids 0..7 per segment
    offset = [256, 512]    # two batch segments of 256 points each

    outputs_mask = jax.random.normal(key, (n_total, num_queries), jnp.float32)
    instance = (jnp.arange(n_total) % num_instances).astype(jnp.int32)

    outputs = {"outputs_mask": outputs_mask}
    targets = {"instance": instance}

    matcher = HungarianMatcherPallas(cost_class=1.0, cost_mask=1.0, cost_dice=1.0)
    matched_outputs, matched_targets, indices, cost_mats = matcher(outputs, targets, offset)

    # correctness: Pallas cost matrices vs plain-JAX reference evaluated on the
    # bf16-rounded logits the kernel actually consumes
    batch_start = 0
    ok = True
    for i, batch_end in enumerate(offset):
        x = outputs_mask[batch_start:batch_end].T.astype(jnp.bfloat16).astype(jnp.float32)
        num_inst = int(jnp.max(instance[batch_start:batch_end])) + 1
        t = jax.nn.one_hot(instance[batch_start:batch_end], num_inst,
                           dtype=jnp.float32).T
        ref = _ref_cost(x, t, 1.0, 1.0)
        got = jax.block_until_ready(cost_mats[i])
        if not bool(jnp.allclose(got, ref, atol=2e-3, rtol=2e-3)):
            ok = False
            print(f"cost matrix mismatch in segment {i}: "
                  f"max abs err {float(jnp.max(jnp.abs(got - ref)))}")
        batch_start = batch_end

    for p, g in zip(matched_outputs, matched_targets):
        jax.block_until_ready(p)
        jax.block_until_ready(g)

    if not ok:
        raise AssertionError("Pallas cost matrices do not match the reference")
    print("KERNEL_OK")
</pallas_src>

<mosaic_0001>
module attributes {stable_mosaic.version = 11 : i64} {
  func.func @_cost_kernel(%arg0: i32, %arg1: i32, %arg2: memref<2xi32, #tpu.memory_space<smem>>, %arg3: memref<1x16x256xbf16, #tpu.memory_space<vmem>>, %arg4: memref<1x1x256xi32, #tpu.memory_space<vmem>>, %arg5: memref<1x1x128xf32, #tpu.memory_space<vmem>>, %arg6: memref<1x16x128xf32, #tpu.memory_space<vmem>>, %arg7: memref<16x128xf32, #tpu.memory_space<vmem>>, %arg8: memref<16x128xf32, #tpu.memory_space<vmem>>, %arg9: memref<16x1xf32, #tpu.memory_space<vmem>>, %arg10: memref<16x1xf32, #tpu.memory_space<vmem>>) attributes {dimension_semantics = [#tpu.dimension_semantics<parallel>, #tpu.dimension_semantics<arbitrary>], iteration_bounds = array<i64: 2, 1>, scalar_prefetch = 1 : i64, scratch_operands = 4 : i64, tpu.core_type = #tpu.core_type<tc>, window_params = [{transform_indices = @transform_0, window_bounds = array<i64: 1, 16, 256>}, {transform_indices = @transform_1, window_bounds = array<i64: 1, 1, 256>}, {transform_indices = @transform_2, window_bounds = array<i64: 1, 1, 128>}, {transform_indices = @transform_3, window_bounds = array<i64: 1, 16, 128>}]} {
    %0 = arith.index_cast %arg0 : i32 to index
    %1 = memref.load %arg2[%0] : memref<2xi32, #tpu.memory_space<smem>>
    %c0_i32 = arith.constant 0 : i32
    %2 = arith.cmpi eq, %arg1, %c0_i32 : i32
    %3 = arith.extui %2 : i1 to i32
    %c0_i32_0 = arith.constant 0 : i32
    %4 = arith.cmpi ne, %3, %c0_i32_0 : i32
    scf.if %4 {
      %cst = arith.constant 0.000000e+00 : f32
      %12 = vector.broadcast %cst : f32 to vector<16x128xf32>
      %c0 = arith.constant 0 : index
      %c0_4 = arith.constant 0 : index
      %13 = vector.load %arg7[%c0, %c0_4] : memref<16x128xf32, #tpu.memory_space<vmem>>, vector<16x128xf32>
      tpu.vector_store %arg7[%c0, %c0_4], %12 {strides = array<i32>} : memref<16x128xf32, #tpu.memory_space<vmem>>, vector<16x128xf32>,
      %cst_5 = arith.constant 0.000000e+00 : f32
      %14 = vector.broadcast %cst_5 : f32 to vector<16x128xf32>
      %c0_6 = arith.constant 0 : index
      %c0_7 = arith.constant 0 : index
      %15 = vector.load %arg8[%c0_6, %c0_7] : memref<16x128xf32, #tpu.memory_space<vmem>>, vector<16x128xf32>
      tpu.vector_store %arg8[%c0_6, %c0_7], %14 {strides = array<i32>} : memref<16x128xf32, #tpu.memory_space<vmem>>, vector<16x128xf32>,
      %cst_8 = arith.constant 0.000000e+00 : f32
      %16 = vector.broadcast %cst_8 : f32 to vector<16x1xf32>
      %c0_9 = arith.constant 0 : index
      %c0_10 = arith.constant 0 : index
      %17 = vector.load %arg9[%c0_9, %c0_10] : memref<16x1xf32, #tpu.memory_space<vmem>>, vector<16x1xf32>
      tpu.vector_store %arg9[%c0_9, %c0_10], %16 {strides = array<i32>} : memref<16x1xf32, #tpu.memory_space<vmem>>, vector<16x1xf32>,
      %cst_11 = arith.constant 0.000000e+00 : f32
      %18 = vector.broadcast %cst_11 : f32 to vector<16x1xf32>
      %c0_12 = arith.constant 0 : index
      %c0_13 = arith.constant 0 : index
      %19 = vector.load %arg10[%c0_12, %c0_13] : memref<16x1xf32, #tpu.memory_space<vmem>>, vector<16x1xf32>
      tpu.vector_store %arg10[%c0_12, %c0_13], %18 {strides = array<i32>} : memref<16x1xf32, #tpu.memory_space<vmem>>, vector<16x1xf32>,
    } else {
    }
    %c256_i32 = arith.constant 256 : i32
    %5 = arith.muli %arg1, %c256_i32 : i32
    %6 = arith.cmpi slt, %5, %1 : i32
    %7 = arith.extui %6 : i1 to i32
    %c0_i32_1 = arith.constant 0 : i32
    %8 = arith.cmpi ne, %7, %c0_i32_1 : i32
    scf.if %8 {
      %c0 = arith.constant 0 : index
      %c0_4 = arith.constant 0 : index
      %c0_5 = arith.constant 0 : index
      %12 = vector.load %arg3[%c0, %c0_4, %c0_5] : memref<1x16x256xbf16, #tpu.memory_space<vmem>>, vector<1x16x256xbf16>
      %13 = vector.shape_cast %12 : vector<1x16x256xbf16> to vector<16x256xbf16>
      %14 = arith.extf %13 : vector<16x256xbf16> to vector<16x256xf32>
      %c0_6 = arith.constant 0 : index
      %c0_7 = arith.constant 0 : index
      %c0_8 = arith.constant 0 : index
      %15 = vector.load %arg4[%c0_6, %c0_7, %c0_8] : memref<1x1x256xi32, #tpu.memory_space<vmem>>, vector<1x1x256xi32>
      %16 = vector.shape_cast %15 : vector<1x1x256xi32> to vector<1x256xi32>
      %17 = tpu.iota {dimensions = array<i32: 0>} : vector<128x256xi32>
      %18 = vector.broadcast %16 : vector<1x256xi32> to vector<128x256xi32>
      %19 = arith.cmpi eq, %17, %18 : vector<128x256xi32>
      %20 = arith.extui %19 : vector<128x256xi1> to vector<128x256xi32>
      %21 = arith.sitofp %20 : vector<128x256xi32> to vector<128x256xf32>
      %22 = arith.truncf %21 : vector<128x256xf32> to vector<128x256xbf16>
      %23 = math.absf %14 : vector<16x256xf32>
      %cst = arith.constant 0.000000e+00 : f32
      %24 = vector.broadcast %cst : f32 to vector<16x256xf32>
      %25 = arith.subf %24, %23 : vector<16x256xf32>
      %26 = math.exp %25 : vector<16x256xf32>
      %cst_9 = arith.constant 1.000000e+00 : f32
      %27 = vector.broadcast %cst_9 : f32 to vector<16x256xf32>
      %28 = arith.addf %27, %26 : vector<16x256xf32>
      %29 = math.log %28 : vector<16x256xf32>
      %cst_10 = arith.constant 0.000000e+00 : f32
      %30 = vector.broadcast %cst_10 : f32 to vector<16x256xf32>
      %31 = arith.maximumf %14, %30 : vector<16x256xf32>
      %32 = arith.addf %29, %31 : vector<16x256xf32>
      %cst_11 = arith.constant 0.000000e+00 : f32
      %33 = vector.broadcast %cst_11 : f32 to vector<16x256xf32>
      %34 = arith.cmpf oge, %14, %33 : vector<16x256xf32>
      %cst_12 = arith.constant 1.000000e+00 : f32
      %35 = vector.broadcast %cst_12 : f32 to vector<16x256xf32>
      %36 = arith.select %34, %35, %26 : vector<16x256xi1>, vector<16x256xf32>
      %cst_13 = arith.constant 1.000000e+00 : f32
      %37 = vector.broadcast %cst_13 : f32 to vector<16x256xf32>
      %38 = arith.addf %37, %26 : vector<16x256xf32>
      %39 = arith.divf %36, %38 : vector<16x256xf32>
      %40 = arith.truncf %39 : vector<16x256xf32> to vector<16x256xbf16>
      %41 = arith.extf %40 : vector<16x256xbf16> to vector<16x256xf32>
      %42 = arith.subf %39, %41 : vector<16x256xf32>
      %43 = arith.truncf %42 : vector<16x256xf32> to vector<16x256xbf16>
      %c0_14 = arith.constant 0 : index
      %c0_15 = arith.constant 0 : index
      %44 = vector.load %arg7[%c0_14, %c0_15] : memref<16x128xf32, #tpu.memory_space<vmem>>, vector<16x128xf32>
      %cst_16 = arith.constant dense<0.000000e+00> : vector<16x128xf32>
      %45 = tpu.matmul %13, %22, %cst_16 {dimension_numbers = #tpu.dot_dimension_numbers<[1], [1], [0], [0], [0, 0, 1, 0], [], []>} : vector<16x256xbf16>, vector<128x256xbf16>, vector<16x128xf32> -> vector<16x128xf32>
      %46 = arith.addf %44, %45 : vector<16x128xf32>
      %c0_17 = arith.constant 0 : index
      %c0_18 = arith.constant 0 : index
      %47 = vector.load %arg7[%c0_17, %c0_18] : memref<16x128xf32, #tpu.memory_space<vmem>>, vector<16x128xf32>
      tpu.vector_store %arg7[%c0_17, %c0_18], %46 {strides = array<i32>} : memref<16x128xf32, #tpu.memory_space<vmem>>, vector<16x128xf32>,
      %c0_19 = arith.constant 0 : index
      %c0_20 = arith.constant 0 : index
      %48 = vector.load %arg8[%c0_19, %c0_20] : memref<16x128xf32, #tpu.memory_space<vmem>>, vector<16x128xf32>
      %cst_21 = arith.constant dense<0.000000e+00> : vector<16x128xf32>
      %49 = tpu.matmul %40, %22, %cst_21 {dimension_numbers = #tpu.dot_dimension_numbers<[1], [1], [0], [0], [0, 0, 1, 0], [], []>} : vector<16x256xbf16>, vector<128x256xbf16>, vector<16x128xf32> -> vector<16x128xf32>
      %cst_22 = arith.constant dense<0.000000e+00> : vector<16x128xf32>
      %50 = tpu.matmul %43, %22, %cst_22 {dimension_numbers = #tpu.dot_dimension_numbers<[1], [1], [0], [0], [0, 0, 1, 0], [], []>} : vector<16x256xbf16>, vector<128x256xbf16>, vector<16x128xf32> -> vector<16x128xf32>
      %51 = arith.addf %49, %50 : vector<16x128xf32>
      %52 = arith.addf %48, %51 : vector<16x128xf32>
      %c0_23 = arith.constant 0 : index
      %c0_24 = arith.constant 0 : index
      %53 = vector.load %arg8[%c0_23, %c0_24] : memref<16x128xf32, #tpu.memory_space<vmem>>, vector<16x128xf32>
      tpu.vector_store %arg8[%c0_23, %c0_24], %52 {strides = array<i32>} : memref<16x128xf32, #tpu.memory_space<vmem>>, vector<16x128xf32>,
      %c256_i32_25 = arith.constant 256 : i32
      %54 = arith.muli %arg1, %c256_i32_25 : i32
      %55 = arith.subi %1, %54 : i32
      %c0_i32_26 = arith.constant 0 : i32
      %c256_i32_27 = arith.constant 256 : i32
      %56 = arith.maxsi %c0_i32_26, %55 : i32
      %57 = arith.minsi %c256_i32_27, %56 : i32
      %c256_i32_28 = arith.constant 256 : i32
      %58 = arith.subi %c256_i32_28, %57 : i32
      %59 = arith.sitofp %58 : i32 to f32
      %c0_29 = arith.constant 0 : index
      %c0_30 = arith.constant 0 : index
      %60 = vector.load %arg9[%c0_29, %c0_30] : memref<16x1xf32, #tpu.memory_space<vmem>>, vector<16x1xf32>
      %cst_31 = arith.constant dense<0.000000e+00> : vector<16xf32>
      %61 = vector.multi_reduction <add>, %39, %cst_31 [1] : vector<16x256xf32> to vector<16xf32>
      %62 = vector.shape_cast %61 : vector<16xf32> to vector<16x1xf32>
      %cst_32 = arith.constant 5.000000e-01 : f32
      %63 = arith.mulf %cst_32, %59 : f32
      %64 = vector.broadcast %63 : f32 to vector<16x1xf32>
      %65 = arith.subf %62, %64 : vector<16x1xf32>
      %66 = arith.addf %60, %65 : vector<16x1xf32>
      %c0_33 = arith.constant 0 : index
      %c0_34 = arith.constant 0 : index
      %67 = vector.load %arg9[%c0_33, %c0_34] : memref<16x1xf32, #tpu.memory_space<vmem>>, vector<16x1xf32>
      tpu.vector_store %arg9[%c0_33, %c0_34], %66 {strides = array<i32>} : memref<16x1xf32, #tpu.memory_space<vmem>>, vector<16x1xf32>,
      %c0_35 = arith.constant 0 : index
      %c0_36 = arith.constant 0 : index
      %68 = vector.load %arg10[%c0_35, %c0_36] : memref<16x1xf32, #tpu.memory_space<vmem>>, vector<16x1xf32>
      %cst_37 = arith.constant dense<0.000000e+00> : vector<16xf32>
      %69 = vector.multi_reduction <add>, %32, %cst_37 [1] : vector<16x256xf32> to vector<16xf32>
      %70 = vector.shape_cast %69 : vector<16xf32> to vector<16x1xf32>
      %cst_38 = arith.constant 0.693147182 : f32
      %71 = arith.mulf %cst_38, %59 : f32
      %72 = vector.broadcast %71 : f32 to vector<16x1xf32>
      %73 = arith.subf %70, %72 : vector<16x1xf32>
      %74 = arith.addf %68, %73 : vector<16x1xf32>
      %c0_39 = arith.constant 0 : index
      %c0_40 = arith.constant 0 : index
      %75 = vector.load %arg10[%c0_39, %c0_40] : memref<16x1xf32, #tpu.memory_space<vmem>>, vector<16x1xf32>
      tpu.vector_store %arg10[%c0_39, %c0_40], %74 {strides = array<i32>} : memref<16x1xf32, #tpu.memory_space<vmem>>, vector<16x1xf32>,
    } else {
    }
    %c0_i32_2 = arith.constant 0 : i32
    %9 = arith.cmpi eq, %arg1, %c0_i32_2 : i32
    %10 = arith.extui %9 : i1 to i32
    %c0_i32_3 = arith.constant 0 : i32
    %11 = arith.cmpi ne, %10, %c0_i32_3 : i32
    scf.if %11 {
      %c1_i32 = arith.constant 1 : i32
      %12 = arith.maxsi %1, %c1_i32 : i32
      %13 = arith.sitofp %12 : i32 to f32
      %c0 = arith.constant 0 : index
      %c0_4 = arith.constant 0 : index
      %14 = vector.load %arg10[%c0, %c0_4] : memref<16x1xf32, #tpu.memory_space<vmem>>, vector<16x1xf32>
      %c0_5 = arith.constant 0 : index
      %c0_6 = arith.constant 0 : index
      %15 = vector.load %arg7[%c0_5, %c0_6] : memref<16x128xf32, #tpu.memory_space<vmem>>, vector<16x128xf32>
      %16 = vector.broadcast %14 : vector<16x1xf32> to vector<16x128xf32>
      %17 = arith.subf %16, %15 : vector<16x128xf32>
      %18 = vector.broadcast %13 : f32 to vector<16x128xf32>
      %19 = arith.divf %17, %18 : vector<16x128xf32>
      %c0_7 = arith.constant 0 : index
      %c0_8 = arith.constant 0 : index
      %20 = vector.load %arg8[%c0_7, %c0_8] : memref<16x128xf32, #tpu.memory_space<vmem>>, vector<16x128xf32>
      %cst = arith.constant 2.000000e+00 : f32
      %21 = vector.broadcast %cst : f32 to vector<16x128xf32>
      %22 = arith.mulf %21, %20 : vector<16x128xf32>
      %c0_9 = arith.constant 0 : index
      %c0_10 = arith.constant 0 : index
      %23 = vector.load %arg9[%c0_9, %c0_10] : memref<16x1xf32, #tpu.memory_space<vmem>>, vector<16x1xf32>
      %c0_11 = arith.constant 0 : index
      %c0_12 = arith.constant 0 : index
      %c0_13 = arith.constant 0 : index
      %24 = vector.load %arg5[%c0_11, %c0_12, %c0_13] : memref<1x1x128xf32, #tpu.memory_space<vmem>>, vector<1x1x128xf32>
      %25 = vector.shape_cast %24 : vector<1x1x128xf32> to vector<1x128xf32>
      %26 = vector.broadcast %23 : vector<16x1xf32> to vector<16x128xf32>
      %27 = vector.broadcast %25 : vector<1x128xf32> to vector<16x128xf32>
      %28 = arith.addf %26, %27 : vector<16x128xf32>
      %cst_14 = arith.constant 1.000000e+00 : f32
      %29 = vector.broadcast %cst_14 : f32 to vector<16x128xf32>
      %30 = arith.addf %22, %29 : vector<16x128xf32>
      %cst_15 = arith.constant 1.000000e+00 : f32
      %31 = vector.broadcast %cst_15 : f32 to vector<16x128xf32>
      %32 = arith.addf %28, %31 : vector<16x128xf32>
      %33 = arith.divf %30, %32 : vector<16x128xf32>
      %cst_16 = arith.constant 1.000000e+00 : f32
      %34 = vector.broadcast %cst_16 : f32 to vector<16x128xf32>
      %35 = arith.subf %34, %33 : vector<16x128xf32>
      %cst_17 = arith.constant 1.000000e+00 : f32
      %36 = vector.broadcast %cst_17 : f32 to vector<16x128xf32>
      %37 = arith.mulf %36, %19 : vector<16x128xf32>
      %cst_18 = arith.constant 1.000000e+00 : f32
      %38 = vector.broadcast %cst_18 : f32 to vector<16x128xf32>
      %39 = arith.mulf %38, %35 : vector<16x128xf32>
      %40 = arith.addf %37, %39 : vector<16x128xf32>
      %c0_19 = arith.constant 0 : index
      %c0_20 = arith.constant 0 : index
      %c0_21 = arith.constant 0 : index
      %41 = vector.load %arg6[%c0_19, %c0_20, %c0_21] : memref<1x16x128xf32, #tpu.memory_space<vmem>>, vector<1x16x128xf32>
      %42 = vector.shape_cast %41 : vector<1x16x128xf32> to vector<16x128xf32>
      %43 = vector.shape_cast %40 : vector<16x128xf32> to vector<1x16x128xf32>
      tpu.vector_store %arg6[%c0_19, %c0_20, %c0_21], %43 {strides = array<i32>} : memref<1x16x128xf32, #tpu.memory_space<vmem>>, vector<1x16x128xf32>,
    } else {
    }
    return
  }
  func.func @transform_0(%arg0: i32, %arg1: i32, %arg2: memref<2xi32, #tpu.memory_space<smem>>) -> (i32, i32, i32) {
    %c0_i32 = arith.constant 0 : i32
    %c0_i32_0 = arith.constant 0 : i32
    return %arg0, %c0_i32, %arg1 : i32, i32, i32
  }
  func.func @transform_1(%arg0: i32, %arg1: i32, %arg2: memref<2xi32, #tpu.memory_space<smem>>) -> (i32, i32, i32) {
    %c0_i32 = arith.constant 0 : i32
    %c0_i32_0 = arith.constant 0 : i32
    return %arg0, %c0_i32, %arg1 : i32, i32, i32
  }
  func.func @transform_2(%arg0: i32, %arg1: i32, %arg2: memref<2xi32, #tpu.memory_space<smem>>) -> (i32, i32, i32) {
    %c0_i32 = arith.constant 0 : i32
    %c0_i32_0 = arith.constant 0 : i32
    %c0_i32_1 = arith.constant 0 : i32
    return %arg0, %c0_i32, %c0_i32_0 : i32, i32, i32
  }
  func.func @transform_3(%arg0: i32, %arg1: i32, %arg2: memref<2xi32, #tpu.memory_space<smem>>) -> (i32, i32, i32) {
    %c0_i32 = arith.constant 0 : i32
    %c0_i32_0 = arith.constant 0 : i32
    %c0_i32_1 = arith.constant 0 : i32
    return %arg0, %c0_i32, %c0_i32_0 : i32, i32, i32
  }
}

</mosaic_0001>

<bundles_post_ra>
// kernel: tpu_custom_call.1
= control target key start
LH: loop header
LB: loop body
LE: loop exit
PB: predicated region body
PF: predicated region fallthrough
CT: control target
= control target key end

     0   :  { %s1826_s0 = inlined_call_operand.hbm [shape: s32[2], index: 0, kind: input, shape index: {}]   ;;  %s1827_s1 = inlined_call_operand.hbm [shape: bf16[2,16,256], index: 1, kind: input, shape index: {}]   ;;  %s1828_s2 = inlined_call_operand.vmem [shape: s32[2,1,256], index: 2, kind: input, shape index: {}]   ;;  %s1829_s3 = inlined_call_operand.vmem [shape: f32[2,1,128], index: 3, kind: input, shape index: {}]   ;;  %s1830_s4 = inlined_call_operand.hbm [shape: f32[2,16,128], index: 4, kind: output, shape index: {}]  }
   0x1   :  { %s1120_s17 = scalar_lea.hbm %s1826_s0, 16 }
   0x2   :  { %p1121_p0 = scmp.ne.s32.totalorder %s1826_s0, %s1120_s17  ;;  %p1124_p1 = scmp.lt.u32.totalorder %s1120_s17, %s1826_s0 }
   0x4   :  { %p1126_p2 = pnand %p1124_p1, %p1121_p0 }
   0x6   :  { %1129 = shalt.err (!%p1126_p2)  }
   0x7   :  { %s1246_s22 = smov [#allocation7]  }
   0x8   :  { %10 = dma.hbm_to_smem %s1826_s0, 16, %s1246_s22, [#allocation6] }
   0x9   :  { %1212 = dma.done.wait [#allocation6], 16 }
   0xa   :  { %1213 = vsyncadd [#allocation6], 4294967280 }
   0xb   :  { %12 = sfence }
   0xc   :  { %13 = vsyncpa [#allocation9], 0 }
   0xd   :  { %15 = vsyncpa [#allocation9 + $0x1], 0 }
   0xe   :  { %16 = vsyncpa [#allocation10], 0 }
   0xf   :  { %18 = vsyncpa [#allocation10 + $0x1], 0  ;;  %s1293_s25 = smov 0   ;;  %s1295_s26 = smov 0  }
  0x10   :  { %s1297_s27 = smov 0   ;;  %s1299_s28 = smov 0  }
  0x11   :  { %s1301_s29 = smov 0   ;;  %s1303_s30 = smov 0  }
  0x12 LB: > { %s858_s0 = sadd.s32 4294967295, %s1244_s30   ;;  %s859_s5 = sadd.s32 4294967294, %s1244_s30   ;;  %s1244_s30 = sphi %s1303_s30, %s24_s30   ;;  %s1240_s29 = sphi %s1301_s29, %s1890_s29   ;;  %s1236_s28 = sphi %s1299_s28, %s1889_s28   ;;  %s1232_s27 = sphi %s1297_s27, %s1888_s27   ;;  %s1228_s26 = sphi %s1295_s26, %s1887_s26   ;;  %s1224_s25 = sphi %s1293_s25, %s1886_s25  }
  0x13   : > { %s36_s6 = sadd.s32 1, %s1240_s29  ;;  %s45_s7 = sadd.s32 1, %s1232_s27 }
  0x14   : > { %p38_p3 = scmp.ge.s32.totalorder %s36_s6, 2  ;;  %p52_p4 = scmp.ne.s32.totalorder %s1232_s27, %s1228_s26 }
  0x15   : > { %p53_p5 = scmp.eq.s32.totalorder %s1244_s30, 0  ;;  %p58_p6 = scmp.ne.s32.totalorder %s1228_s26, %s1224_s25 }
  0x16   : > { %s1892_s6 = smov (%p38_p3, %s36_s6), 0  ;;  %p59_p8 = scmp.eq.s32.totalorder %s858_s0, 0 }
  0x17   : > { %p1334_p7 = por %p53_p5, %p52_p4  ;;  %s40_s9 = ssub.s32 %s1240_s29, %s1892_s6 }
  0x18   : > { %p136_p9 = scmp.eq.s32.totalorder %s858_s0, 1  ;;  %p43_p10 = scmp.eq.s32.totalorder %s40_s9, 0 }
  0x19   : > { %p1340_p11 = por %p59_p8, %p58_p6  ;;  %p142_p13 = scmp.eq.s32.totalorder %s859_s5, 1 }
  0x1a   : > { %p1344_p12 = por %p136_p9, %p52_p4  ;;  %p1028_p2 = scmp.lt.s32.totalorder %s1244_s30, 2 }
  0x1b   : > { %s1349_s12 = scalar_select %p43_p10, %s1232_s27, %s45_s7  }
  0x1c   : > { %s1839_s11 = scalar_select %p1344_p12, 1, 0 }
  0x1d   : > { %p1351_p0 = por %p142_p13, %p58_p6  ;;  %s162_s14 = sand.u32 1, %s1232_s27  }
  0x1e   : > { %s862_s15 = sshll.u32 %s162_s14, 4  ;;  %s1012_s16 = sshll.u32 %s1240_s29, 8 }
  0x1f   : > { %s1840_s13 = scalar_select %p1351_p0, 1, 0 }
  0x20   : > { %s1362_s19 = scalar_lea.hbm %s1827_s1, %s1012_s16  ;;  %s166_s20 = scalar_lea.vmem [#allocation8], %s862_s15 }
  0x21   : > { %s175_s21 = sshll.u32 %s166_s20, 4  ;;  %p1368_p3 = pnand %p1028_p2, %p1334_p7  ;;  %s1364_s21 = int_to_ptr.vmem [resolvable:$true] %s175_s21 }
  0x22   : > { %s1373_s23 = scalar_lea.sflag [#allocation9], %s162_s14  ;;  %s1130_s24 = scalar_lea.hbm %s1362_s19, 256 }
  0x23   : > { %p1131_p5 = scmp.ne.s32.totalorder %s1362_s19, %s1130_s24  ;;  %p1132_p6 = pneg %p1368_p3 }
  0x24   : > { %s1135_s7 = scalar_lea.hbm %s1827_s1, 512  ;;  %p1136_p7 = scmp.lt.u32.totalorder %s1362_s19, %s1827_s1 }
  0x25   : > { %p1133_p8 = pnand %p1132_p6, %p1131_p5  ;;  %p1137_p10 = scmp.lt.u32.totalorder %s1135_s7, %s1130_s24 }
  0x26   : > { %p1139_p2 = scmp.lt.u32.totalorder %s1130_s24, %s1362_s19 }
  0x27   : > { %p1134_p9 = pneg %p1133_p8  ;;  %p1138_p13 = por %p1137_p10, %p1136_p7 }
  0x29   : > { %p1140_p1 = por %p1139_p2, %p1138_p13 }
  0x2b   : > { %p1141_p4 = pnand %p1140_p1, %p1134_p9 }
  0x2d   : > { %1144 = shalt.err (!%p1141_p4)
}
  0x2e   : > { %s1145_s14 = scalar_lea.vmem %s1364_s21, 256  ;;  %s1247_s15 = smov [#allocation8]  }
  0x2f   : > { %p1146_p5 = scmp.ne.s32.totalorder %s1364_s21, %s1145_s14  ;;  %s1150_s16 = sshll.u32 %s1247_s15, 4  ;;  %s1151_s16 = int_to_ptr.vmem [resolvable:$false] %s1150_s16 }
  0x30   : > { %s1152_s17 = scalar_lea.vmem %s1151_s16, 512  ;;  %p1153_p12 = scmp.lt.s32.totalorder %s1364_s21, %s1151_s16 }
  0x31   : > { %p1148_p8 = pnand %p1146_p5, %p1132_p6  ;;  %p1154_p7 = scmp.lt.s32.totalorder %s1152_s17, %s1145_s14 }
  0x33   : > { %p1149_p0 = pneg %p1148_p8  ;;  %p1155_p10 = por %p1154_p7, %p1153_p12 }
  0x35   : > { %p1156_p13 = pnand %p1155_p10, %p1149_p0 }
  0x37   : > { %1159 = shalt.err (!%p1156_p13)
}
  0x38   : > { %s1248_s18 = smov 128   ;;  %s1249_s20 = smov 8  }
  0x39   : > { %1023 = dma.hbm_to_vmem [thread:$0]  (!%p1368_p3), %s1362_s19, 256, %s1364_s21, %s1373_s23, %s1248_s18, %s1248_s18, %s1249_s20  }
  0x3a   : > { %p201_p1 = scmp.lt.s32.totalorder %s1244_s30, 3  ;;  %p1842_p4 = scmp.ge.s32.totalorder %s1244_s30, 1 }
  0x3c   : > { %p202_p6 = pnand %p1842_p4, %p201_p1 }
  0x3d   : > { %s1405_s24 = sand.u32 (!%p202_p6), 1, %s1228_s26  }
  0x3e   : > { %205 = sbr.rel (%p202_p6) target bundleno = 604 (0x25c), region = 32  ;;  %s866_s0 = sshll.u32 (!%p202_p6), %s1405_s24, 4 }
  0x3f   : > { %s208_s5 = scalar_lea.sflag (!%p202_p6), [#allocation9], %s1405_s24  ;;  %s211_s7 = scalar_lea.vmem (!%p202_p6), [#allocation8], %s866_s0 }
  0x45   : > { %1215 = dma.done.wait (%p1340_p11), %s208_s5, 256  }
  0x46   : > { %1217 = vsyncadd (%p1340_p11), %s208_s5, 4294967040  ;;  %p247_p12 = scmp.lt.s32.totalorder %s1236_s28, 1  ;;  %vm1832_vm0 = vcmask 7168   ;;  %s1415_s19 = sld [smem:[#allocation7 + %s1236_s28]]  ;;  %v1250_v0 = vmov 0.0  }
  0x47   : > { %264 = vst [vmem:[#allocation2] sm:$0xff] %v1250_v0  ;;  %265 = vst [vmem:[#allocation2 + $0x8] sm:$0xff] %v1250_v0  ;;  %s1432_s16 = scalar_lea.vmem [#allocation11], %s866_s0 }
  0x48   : > { %266 = vst [vmem:[#allocation3] sm:$0xff] %v1250_v0  ;;  %267 = vst [vmem:[#allocation3 + $0x8] sm:$0xff] %v1250_v0  ;;  %s1422_s10 = scalar_select %p247_p12, %s1236_s28, 1 }
  0x49   : > { %269 = vst.msk [vmem:[#allocation4] sm:$0xff] %vm1832_vm0, %v1250_v0  ;;  %270 = vst.msk [vmem:[#allocation4 + $0x8] sm:$0xff] %vm1832_vm0, %v1250_v0 }
  0x4a   : > { %271 = vst.msk [vmem:[#allocation5] sm:$0xff] %vm1832_vm0, %v1250_v0  ;;  %272 = vst.msk [vmem:[#allocation5 + $0x8] sm:$0xff] %vm1832_vm0, %v1250_v0  ;;  %s868_s21 = sshll.u32 %s1422_s10, 1  ;;  %s257_s8 = scalar_lea.vmem %s1829_s3, %s1422_s10 }
  0x4b   : > { %s253_s15 = scalar_lea.vmem %s1828_s2, %s868_s21 }
  0x4c   : > { %p870_p11 = scmp.le.s32.totalorder %s1415_s19, 0 }
  0x4d   : > { %v285_v1 = vlaneseq (!%p870_p11)  ;;  %v1435_v2 = vld [vmem:[%s211_s7] sm:$0xff] (!%p870_p11)  ;;  %v1437_v3 = vld [vmem:[%s211_s7 + $0x8] sm:$0xff] (!%p870_p11)  ;;  %v1251_v19 = vmov (!%p870_p11), 1.0|1.0   ;;  %v1853_v41 = vmov (!%p870_p11), 0  ;;  %v1855_v42 = vmov (!%p870_p11), 0 }
  0x4e   : > { %277 = sbr.rel (%p870_p11) target bundleno = 434 (0x1b2), region = 44  ;;  %v904_v5 = vcombine.high (!%p870_p11), %v1435_v2, %v1437_v3  ;;  %v903_v6 = vcombine.low (!%p870_p11), %v1435_v2, %v1437_v3  ;;  %v284_v7 = vld [vmem:[%s253_s15] sm:$0x3] (!%p870_p11)  ;;  %v1455_v15 = vunpack.c.l.bf16 (!%p870_p11), %v1435_v2  ;;  %v1458_v16 = vunpack.c.h.bf16 (!%p870_p11), %v1435_v2  ;;  %p632_p0 = scmp.gt.s32.totalorder (!%p870_p11), %s1415_s19, 0 }
  0x4f   : > { %v1439_v4 = vshrl.u32 (!%p870_p11), %v285_v1, 7  ;;  %v1473_v18 = vunpack.c.l.bf16 (!%p870_p11), %v1437_v3  ;;  %v1492_v24 = vunpack.c.h.bf16 (!%p870_p11), %v1437_v3  ;;  %v1857_v49 = vmov (!%p870_p11), 0  ;;  %p1001_p3 = scmp.lt.s32.totalorder (!%p870_p11), %s1415_s19, 256 }
  0x50   : > { %530 = vmatprep.mubr.bf16.mxu0 (!%p870_p11), %v904_v5  ;;  %v422_v25 = vand.u32 (!%p870_p11), 2147483647, %v1455_v15  ;;  %v423_v26 = vand.u32 (!%p870_p11), 2147483647, %v1458_v16  ;;  %v638_v3 = vld [vmem:[#allocation4] sm:$0xff] (!%p870_p11)  ;;  %v639_v58 = vld [vmem:[#allocation4 + $0x8] sm:$0xff] (!%p870_p11) }
  0x51   : > { %v287_v8 = vadd.s32 (!%p870_p11), 8, %v1439_v4  ;;  %v308_v9 = vsub.s32 (!%p870_p11), 1, %v1439_v4  ;;  %v304_v10 = vsub.s32 (!%p870_p11), 0, %v1439_v4  ;;  %v288_v11 = vadd.s32 (!%p870_p11), 16, %v1439_v4  ;;  %v655_v31 = vld [vmem:[#allocation5] sm:$0xff] (!%p870_p11) }
  0x52   : > { %v289_v12 = vadd.s32 (!%p870_p11), 24, %v1439_v4  ;;  %v290_v21 = vadd.s32 (!%p870_p11), 32, %v1439_v4  ;;  %v291_v22 = vadd.s32 (!%p870_p11), 40, %v1439_v4  ;;  %v424_v27 = vand.u32 (!%p870_p11), 2147483647, %v1473_v18 }
  0x53   : > { %v1450_v13 = vrot.slane (!%p870_p11), %v284_v7, %v308_v9  ;;  %v1452_v14 = vrot.slane (!%p870_p11), %v284_v7, %v304_v10  ;;  %v425_v28 = vand.u32 (!%p870_p11), 2147483647, %v1492_v24  ;;  %v426_v29 = vsub.f32 (!%p870_p11), 0.0, %v422_v25 }
  0x54   : > { %v427_v30 = vsub.f32 (!%p870_p11), 0.0, %v423_v26  ;;  %v428_v33 = vsub.f32 (!%p870_p11), 0.0, %v424_v27  ;;  %v292_v35 = vadd.s32 (!%p870_p11), 48, %v1439_v4  ;;  %v293_v36 = vadd.s32 (!%p870_p11), 56, %v1439_v4 }
  0x55   : > { %vm311_vm1 = vcmp.eq.s32.totalorder %v1439_v4, %v1450_v13  ;;  %vm313_vm2 = vcmp.eq.s32.totalorder %v287_v8, %v1450_v13  ;;  %vm310_vm3 = vcmp.eq.s32.totalorder %v1439_v4, %v1452_v14  ;;  %vm312_vm4 = vcmp.eq.s32.totalorder %v287_v8, %v1452_v14  ;;  %s633_s17 = scalar_select %p632_p0, %s1415_s19, 0 }
  0x56   : > { %vm1466_vm5 = vmpackc.low %vm313_vm2, %vm311_vm1  ;;  %vm315_vm6 = vcmp.eq.s32.totalorder %v288_v11, %v1450_v13  ;;  %vm317_vm7 = vcmp.eq.s32.totalorder %v289_v12, %v1450_v13  ;;  %vm314_vm10 = vcmp.eq.s32.totalorder %v288_v11, %v1452_v14  ;;  %vm316_vm11 = vcmp.eq.s32.totalorder %v289_v12, %v1452_v14 }
  0x57   : > { %906 = vmatprep.subr.msk.bf16.mxu0 %vm1466_vm5, %v1251_v19  ;;  %vm1478_vm8 = vmpackc.low %vm312_vm4, %vm310_vm3  ;;  %938 = vmatprep.subr.msk.bf16.mxu1 %vm1466_vm5, %v1251_v19  ;;  %vm319_vm12 = vcmp.eq.s32.totalorder %v290_v21, %v1450_v13  ;;  %vm321_vm13 = vcmp.eq.s32.totalorder %v291_v22, %v1450_v13  ;;  %v429_v34 = vsub.f32 0.0, %v425_v28  ;;  %v430_v37 = vmul.f32 1.442695, %v426_v29  ;;  %s1894_s17 = smov (!%p1001_p3, %s633_s17), 256  ;;  %v543_v28 = vld [vmem:[#allocation3] sm:$0xff] }
  0x58   : > { %908 = vmatpush1.bf16.xpose.msk.msra.mxu0 %vm1478_vm8, %v1251_v19  ;;  %vm1487_vm9 = vmpackc.low %vm317_vm7, %vm315_vm6  ;;  %940 = vmatpush1.bf16.xpose.msk.msra.mxu1 %vm1478_vm8, %v1251_v19  ;;  %v432_v38 = vmul.f32 1.442695, %v427_v30  ;;  %v434_v39 = vmul.f32 1.442695, %v428_v33  ;;  %vm318_vm1 = vcmp.eq.s32.totalorder %v290_v21, %v1452_v14  ;;  %vm320_vm2 = vcmp.eq.s32.totalorder %v291_v22, %v1452_v14  ;;  %s636_s18 = ssub.s32 256, %s1894_s17 }
  0x59   : > { %910 = vmatprep.subr.msk.bf16.mxu0 %vm1487_vm9, %v1251_v19  ;;  %942 = vmatprep.subr.msk.bf16.mxu1 %vm1487_vm9, %v1251_v19  ;;  %vm1514_vm14 = vmpackc.low %vm316_vm11, %vm314_vm10  ;;  %v436_v40 = vmul.f32 1.442695, %v429_v34  ;;  %1088 = vpow2.f32 %v430_v37  ;;  %vm323_vm3 = vcmp.eq.s32.totalorder %v292_v35, %v1450_v13  ;;  %vm325_vm4 = vcmp.eq.s32.totalorder %v293_v36, %v1450_v13  ;;  %s637_s20 = scvt.s32.f32 %s636_s18 }
  0x5a   : > { %vm1518_vm15 = vmpackc.low %vm321_vm13, %vm319_vm12  ;;  %1090 = vpow2.f32 %v432_v38  ;;  %v294_v43 = vadd.s32 64, %v1439_v4  ;;  %v295_v44 = vadd.s32 72, %v1439_v4  ;;  %vm322_vm10 = vcmp.eq.s32.totalorder %v292_v35, %v1452_v14 }
  0x5b   : > { %1092 = vpow2.f32 %v434_v39  ;;  %vm1540_vm6 = vmpackc.low %vm320_vm2, %vm318_vm1  ;;  %vm324_vm11 = vcmp.eq.s32.totalorder %v293_v36, %v1452_v14  ;;  %v296_v54 = vadd.s32 80, %v1439_v4  ;;  %v297_v55 = vadd.s32 88, %v1439_v4  ;;  %s646_s0 = smul.f32 0.5, %s637_s20 }
  0x5c   : > { %1094 = vpow2.f32 %v436_v40  ;;  %v1854_v41 = vsel %vm1540_vm6, 4294967295, %v1853_v41  ;;  %vm1544_vm7 = vmpackc.low %vm325_vm4, %vm323_vm3  ;;  %vm327_vm12 = vcmp.eq.s32.totalorder %v294_v43, %v1450_v13  ;;  %vm329_vm13 = vcmp.eq.s32.totalorder %v295_v44, %v1450_v13  ;;  %s663_s5 = smul.f32 0.6931472, %s637_s20 }
  0x5d   : > { %v1856_v42 = vsel %vm1544_vm7, 4294967295, %v1855_v42  ;;  %vm1566_vm1 = vmpackc.low %vm324_vm11, %vm322_vm10  ;;  %vm326_vm3 = vcmp.eq.s32.totalorder %v294_v43, %v1452_v14  ;;  %vm328_vm4 = vcmp.eq.s32.totalorder %v295_v44, %v1452_v14  ;;  %vm331_vm10 = vcmp.eq.s32.totalorder %v296_v54, %v1450_v13 }
  0x5e   : > { %v1858_v49 = vsel %vm1566_vm1, 4294967295, %v1857_v49  ;;  %vm1570_vm2 = vmpackc.low %vm329_vm13, %vm327_vm12  ;;  %vm333_vm11 = vcmp.eq.s32.totalorder %v297_v55, %v1450_v13  ;;  %vm459_vm12 = vcmp.ge.f32.partialorder %v1458_v16, 0.0  ;;  %vm458_vm13 = vcmp.ge.f32.partialorder %v1455_v15, 0.0 }
  0x5f   : > { %vm1594_vm0 = vmpackc.low %vm328_vm4, %vm326_vm3  ;;  %v1605_v59 = vadd.s32 96, %v1439_v4  ;;  %v299_v60 = vadd.s32 104, %v1439_v4  ;;  %vm330_vm3 = vcmp.eq.s32.totalorder %v296_v54, %v1452_v14  ;;  %vm332_vm4 = vcmp.eq.s32.totalorder %v297_v55, %v1452_v14 }
  0x60   : > { %912 = vmatpush1.bf16.xpose.msk.msra.mxu0 %vm1514_vm14, %v1251_v19  ;;  %944 = vmatpush1.bf16.xpose.msk.msra.mxu1 %vm1514_vm14, %v1251_v19  ;;  %v450_v11 = vmax.f32 %v1455_v15, 0.0  ;;  %v451_v26 = vmax.f32 %v1458_v16, 0.0  ;;  %v452_v29 = vmax.f32 %v1473_v18, 0.0  ;;  %v1867_v33 = vmov 0 }
  0x61   : > { %914 = vmatprep.subr.msk.bf16.mxu0 %vm1518_vm15, %v1251_v19  ;;  %946 = vmatprep.subr.msk.bf16.mxu1 %vm1518_vm15, %v1251_v19  ;;  %v453_v36 = vmax.f32 %v1492_v24, 0.0  ;;  %v300_v38 = vadd.s32 112, %v1439_v4  ;;  %v301_v39 = vadd.s32 120, %v1439_v4  ;;  %v647_v2 = vstv %s646_s0 }
  0x62   : > { %v664_v23 = vstv %s663_s5 }
  0x63   : > { %v1089_v45 = vpop.eup %1088 }
  0x64   : > { %v1091_v46 = vpop.eup %1090  ;;  %v438_v47 = vadd.f32 1.0, %v1089_v45  ;;  %v462_v62 = vsel %vm458_vm13, 1.0, %v1089_v45  ;;  %vm336_vm13 = vcmp.eq.s32.totalorder %v299_v60, %v1452_v14 }
  0x65   : > { %v1093_v48 = vpop.eup %1092  ;;  %v439_v50 = vadd.f32 1.0, %v1091_v46  ;;  %v463_v61 = vsel %vm459_vm12, 1.0, %v1091_v46  ;;  %vm334_vm12 = vcmp.eq.s32.totalorder %v1605_v59, %v1452_v14 }
  0x66   : > { %v1095_v51 = vpop.eup %1094  ;;  %v440_v53 = vadd.f32 1.0, %v1093_v48  ;;  %1096 = vrcp.f32 %v438_v47 }
  0x67   : > { %v441_v56 = vadd.f32 1.0, %v1095_v51  ;;  %1098 = vrcp.f32 %v439_v50 }
  0x68   : > { %916 = vmatpush1.bf16.xpose.msk.msra.mxu0 %vm1540_vm6, %v1251_v19  ;;  %948 = vmatpush1.bf16.xpose.msk.msra.mxu1 %vm1540_vm6, %v1251_v19  ;;  %1100 = vrcp.f32 %v440_v53  ;;  %vm460_vm6 = vcmp.ge.f32.partialorder %v1473_v18, 0.0 }
  0x69   : > { %918 = vmatprep.subr.msk.bf16.mxu0 %vm1544_vm7, %v1251_v19  ;;  %950 = vmatprep.subr.msk.bf16.mxu1 %vm1544_vm7, %v1251_v19  ;;  %1102 = vrcp.f32 %v441_v56  ;;  %vm1598_vm7 = vmpackc.low %vm333_vm11, %vm331_vm10  ;;  %v464_v5 = vsel %vm460_vm6, 1.0, %v1093_v48  ;;  %vm335_vm10 = vcmp.eq.s32.totalorder %v1605_v59, %v1450_v13  ;;  %vm337_vm11 = vcmp.eq.s32.totalorder %v299_v60, %v1450_v13 }
  0x6a   : > { %1104 = vlog2.f32 %v438_v47  ;;  %vm1634_vm6 = vmpackc.low %vm332_vm4, %vm330_vm3  ;;  %vm339_vm3 = vcmp.eq.s32.totalorder %v300_v38, %v1450_v13  ;;  %vm341_vm4 = vcmp.eq.s32.totalorder %v301_v39, %v1450_v13 }
  0x6b   : > { %1106 = vlog2.f32 %v439_v50 }
  0x6c   : > { %1108 = vlog2.f32 %v440_v53 }
  0x6d   : > { %1110 = vlog2.f32 %v441_v56 }
  0x70   : > { %920 = vmatpush1.bf16.xpose.msk.msra.mxu0 %vm1566_vm1, %v1251_v19  ;;  %952 = vmatpush1.bf16.xpose.msk.msra.mxu1 %vm1566_vm1, %v1251_v19  ;;  %vm461_vm1 = vcmp.ge.f32.partialorder %v1492_v24, 0.0  ;;  %v1097_v63 = vpop.eup %1096 }
  0x71   : > { %922 = vmatprep.subr.msk.bf16.mxu0 %vm1570_vm2, %v1251_v19  ;;  %954 = vmatprep.subr.msk.bf16.mxu1 %vm1570_vm2, %v1251_v19  ;;  %v1099_v0 = vpop.eup %1098  ;;  %v465_v1 = vsel %vm461_vm1, 1.0, %v1095_v51  ;;  %v1616_v9 = vmul.f32 %v1097_v63, %v462_v62  ;;  %vm1642_vm1 = vmpackc.low %vm337_vm11, %vm335_vm10  ;;  %v656_v63 = vld [vmem:[#allocation5 + $0x8] sm:$0xff] }
  0x72   : > { %v1101_v7 = vpop.eup %1100  ;;  %v469_v8 = vmul.f32 %v1099_v0, %v463_v61  ;;  %v1868_v33 = vsel %vm1642_vm1, 4294967295, %v1867_v33  ;;  %vm1669_vm10 = vmpackc.low %vm336_vm13, %vm334_vm12  ;;  %vm340_vm12 = vcmp.eq.s32.totalorder %v301_v39, %v1452_v14 }
  0x73   : > { %v1103_v10 = vpop.eup %1102  ;;  %v471_v22 = vmul.f32 %v1101_v7, %v464_v5  ;;  %vm1673_vm11 = vmpackc.low %vm341_vm4, %vm339_vm3  ;;  %v486_v5 = vld [vmem:[#allocation2] sm:$0xff] }
  0x74   : > { %v1105_v12 = vpop.eup %1104  ;;  %v473_v21 = vmul.f32 %v1103_v10, %v465_v1  ;;  %v640_v25 = vadd.f32 %v469_v8, %v1616_v9 }
  0x75   : > { %v1107_v27 = vpop.eup %1106  ;;  %v443_v15 = vmul.f32 0.6931472, %v1105_v12  ;;  %v474_v55 = vpack.c.bf16 %v471_v22, %v1616_v9 }
  0x76   : > { %v1109_v30 = vpop.eup %1108  ;;  %v475_v16 = vpack.c.bf16 %v473_v21, %v469_v8  ;;  %641 = vadd.xlane.f32.xlu0 %v640_v25  ;;  %v445_v34 = vmul.f32 0.6931472, %v1107_v27  ;;  %v643_v35 = vadd.f32 %v473_v21, %v471_v22 }
  0x77   : > { %v1111_v37 = vpop.eup %1110  ;;  %v454_v18 = vadd.f32 %v450_v11, %v443_v15  ;;  %v447_v40 = vmul.f32 0.6931472, %v1109_v30  ;;  %v476_v59 = vunpack.c.l.bf16 %v474_v55  ;;  %v478_v60 = vunpack.c.h.bf16 %v474_v55 }
  0x78   : > { %924 = vmatpush1.bf16.xpose.msk.msra.mxu0 %vm1594_vm0, %v1251_v19  ;;  %956 = vmatpush1.bf16.xpose.msk.msra.mxu1 %vm1594_vm0, %v1251_v19  ;;  %v477_v43 = vunpack.c.l.bf16 %v475_v16  ;;  %v479_v44 = vunpack.c.h.bf16 %v475_v16  ;;  %v455_v45 = vadd.f32 %v451_v26, %v445_v34  ;;  %v449_v46 = vmul.f32 0.6931472, %v1111_v37 }
  0x79   : > { %926 = vmatprep.subr.msk.bf16.mxu0 %vm1598_vm7, %v1251_v19  ;;  %958 = vmatprep.subr.msk.bf16.mxu1 %vm1598_vm7, %v1251_v19  ;;  %v456_v4 = vadd.f32 %v452_v29, %v447_v40  ;;  %v482_v61 = vsub.f32 %v471_v22, %v478_v60 }
  0x7a   : > { %v481_v24 = vsub.f32 %v469_v8, %v477_v43  ;;  %v483_v47 = vsub.f32 %v473_v21, %v479_v44  ;;  %v657_v48 = vadd.f32 %v455_v45, %v454_v18  ;;  %644 = vadd.xlane.f32.xlu0 %v643_v35  ;;  %v457_v50 = vadd.f32 %v453_v36, %v449_v46  ;;  %v487_v8 = vld [vmem:[#allocation2 + $0x8] sm:$0xff] }
  0x7c   : > { %v485_v51 = vpack.c.bf16 %v483_v47, %v481_v24  ;;  %658 = vadd.xlane.f32.xlu1 %v657_v48  ;;  %v660_v53 = vadd.f32 %v457_v50, %v456_v4 }
  0x7e   : > { %577 = vmatprep.mubr.bf16.mxu1 %v485_v51 }
  0x80   : > { %928 = vmatpush1.bf16.xpose.msk.msra.mxu0 %vm1634_vm6, %v1251_v19  ;;  %960 = vmatpush1.bf16.xpose.msk.msra.mxu1 %vm1634_vm6, %v1251_v19 }
  0x81   : > { %930 = vmatprep.subr.msk.bf16.mxu0 %vm1642_vm1, %v1251_v19  ;;  %962 = vmatprep.subr.msk.bf16.mxu1 %vm1642_vm1, %v1251_v19  ;;  %vm338_vm1 = vcmp.eq.s32.totalorder %v300_v38, %v1452_v14  ;;  %v480_v14 = vsub.f32 %v1616_v9, %v476_v59 }
  0x82   : > { %661 = vadd.xlane.f32.xlu1 %v660_v53  ;;  %vm1692_vm13 = vmpackc.low %vm340_vm12, %vm338_vm1 }
  0x83   : > { %v484_v62 = vpack.c.bf16 %v482_v61, %v480_v14 }
  0x88   : > { %932 = vmatpush1.bf16.xpose.msk.msra.mxu0 %vm1669_vm10, %v1251_v19  ;;  %964 = vmatpush1.bf16.xpose.msk.msra.mxu1 %vm1669_vm10, %v1251_v19 }
  0x89   : > { %934 = vmatprep.subr.msk.bf16.mxu0 %vm1673_vm11, %v1251_v19  ;;  %966 = vmatprep.subr.msk.bf16.mxu1 %vm1673_vm11, %v1251_v19 }
  0x90   : > { %936 = vmatpush1.bf16.xpose.msk.msra.mxu0 %vm1692_vm13, %v1251_v19  ;;  %968 = vmatpush1.bf16.xpose.msk.msra.mxu1 %vm1692_vm13, %v1251_v19 }
  0x91   : > { %970 = vmatprep.subr.msk.bf16.mxu0 %vm1466_vm5, %v1251_v19  ;;  %vm1875_vm5 = vnez %v1854_v41 }
  0x97   : > { %531 = vmatmul.mubr.bf16.vlgmr.msra.gmra.mrb[0].mxu0 %v903_v6  ;;  %578 = vmatmul.mubr.bf16.vlgmr.msra.gmra.mrb[0].mxu1 %v484_v62 }
  0x98   : > { %972 = vmatpush1.bf16.xpose.msk.msra.mxu0 %vm1478_vm8, %v1251_v19  ;;  %618 = vmatprep.mubr.bf16.mxu0 %v475_v16  ;;  %vm1876_vm8 = vnez %v1856_v42 }
  0x99   : > { %974 = vmatprep.subr.msk.bf16.mxu0 %vm1487_vm9, %v1251_v19  ;;  %vm1877_vm9 = vnez %v1858_v49 }
  0xa0   : > { %976 = vmatpush1.bf16.xpose.msk.msra.mxu0 %vm1514_vm14, %v1251_v19  ;;  %vm1878_vm14 = vnez %v1868_v33  ;;  %v544_v33 = vld [vmem:[#allocation3 + $0x8] sm:$0xff] }
  0xa1   : > { %978 = vmatprep.subr.msk.bf16.mxu0 %vm1518_vm15, %v1251_v19 }
  0xa8   : > { %980 = vmatpush1.bf16.xpose.msk.msra.mxu0 %vm1875_vm5, %v1251_v19 }
  0xa9   : > { %982 = vmatprep.subr.msk.bf16.mxu0 %vm1876_vm8, %v1251_v19 }
  0xb0   : > { %984 = vmatpush1.bf16.xpose.msk.msra.mxu0 %vm1877_vm9, %v1251_v19 }
  0xb1   : > { %986 = vmatprep.subr.msk.bf16.mxu0 %vm1570_vm2, %v1251_v19 }
  0xb8   : > { %988 = vmatpush1.bf16.xpose.msk.msra.mxu0 %vm1594_vm0, %v1251_v19  ;;  %vm1879_vm0 = vcmask 7168  }
  0xb9   : > { %990 = vmatprep.subr.msk.bf16.mxu0 %vm1598_vm7, %v1251_v19  ;;  %vm1880_vm15 = vmmov %vm1879_vm0 }
  0xba   : > { %vm1881_vm7 = vmmov %vm1879_vm0 }
  0xbb   : > { %vm1882_vm2 = vmmov %vm1879_vm0 }
  0xc0   : > { %992 = vmatpush1.bf16.xpose.msk.msra.mxu0 %vm1634_vm6, %v1251_v19 }
  0xc1   : > { %994 = vmatprep.subr.msk.bf16.mxu0 %vm1878_vm14, %v1251_v19 }
  0xc8   : > { %996 = vmatpush1.bf16.xpose.msk.msra.mxu0 %vm1669_vm10, %v1251_v19 }
  0xc9   : > { %998 = vmatprep.subr.msk.bf16.mxu0 %vm1673_vm11, %v1251_v19 }
  0xd0   : > { %1000 = vmatpush1.bf16.xpose.msk.msra.mxu0 %vm1692_vm13, %v1251_v19 }
  0xd7   : > { %619 = vmatmul.mubr.bf16.vlgmr.msra.gmra.mrb[4].mxu0 %v474_v55 }
 0x103   : > { %v642_v6 = vpop.xlane.xlu0 %641 }
 0x104   : > { %v648_v17 = vsub.f32 %v642_v6, %v647_v2 }
 0x106   : > { %v650_v20 = vadd.f32 %v648_v17, %v638_v3 }
 0x107   : > { %v645_v42 = vpop.xlane.xlu0 %644 }
 0x108   : > { %653 = vst.msk [vmem:[#allocation4] sm:$0xff] %vm1879_vm0, %v650_v20  ;;  %v649_v52 = vsub.f32 %v645_v42, %v647_v2 }
 0x109   : > { %v659_v32 = vpop.xlane.xlu1 %658 }
 0x10a   : > { %v665_v19 = vsub.f32 %v659_v32, %v664_v23  ;;  %v651_v0 = vadd.f32 %v649_v52, %v639_v58 }
 0x10c   : > { %v667_v41 = vadd.f32 %v665_v19, %v655_v31  ;;  %654 = vst.msk [vmem:[#allocation4 + $0x8] sm:$0xff] %vm1881_vm7, %v651_v0 }
 0x10e   : > { %669 = vst.msk [vmem:[#allocation5] sm:$0xff] %vm1880_vm15, %v667_v41 }
 0x10f   : > { %v662_v49 = vpop.xlane.xlu1 %661 }
 0x110   : > { %v666_v57 = vsub.f32 %v662_v49, %v664_v23 }
 0x112   : > { %v668_v1 = vadd.f32 %v666_v57, %v656_v63 }
 0x114   : > { %670 = vst.msk [vmem:[#allocation5 + $0x8] sm:$0xff] %vm1882_vm2, %v668_v1 }
 0x16a   : > { %v532_v7 = vpop.f32.mrb[0].mxu0  ;;  %v579_v22 = vpop.f32.mrb[0].mxu1 }
 0x16b   : > { %v539_v9 = vadd.f32 %v532_v7, %v486_v5  ;;  %v534_v10 = vpop.f32.mrb[1].mxu0  ;;  %v581_v25 = vpop.f32.mrb[1].mxu1 }
 0x16c   : > { %v535_v11 = vpop.f32.mrb[2].mxu0  ;;  %v582_v26 = vpop.f32.mrb[2].mxu1 }
 0x16d   : > { %541 = vst [vmem:[#allocation2] sm:$0xff] %v539_v9  ;;  %v540_v12 = vadd.f32 %v535_v11, %v487_v8  ;;  %v537_v21 = vpop.f32.mrb[3].mxu0  ;;  %v584_v27 = vpop.f32.mrb[3].mxu1 }
 0x16f   : > { %542 = vst [vmem:[#allocation2 + $0x8] sm:$0xff] %v540_v12 }
 0x1aa   : > { %v620_v15 = vpop.f32.mrb[4].mxu0 }
 0x1ab   : > { %v621_v29 = vadd.f32 %v620_v15, %v579_v22  ;;  %v622_v30 = vpop.f32.mrb[5].mxu0 }
 0x1ac   : > { %v623_v16 = vpop.f32.mrb[6].mxu0 }
 0x1ad   : > { %v627_v34 = vadd.f32 %v621_v29, %v543_v28  ;;  %v624_v35 = vadd.f32 %v623_v16, %v582_v26  ;;  %v625_v36 = vpop.f32.mrb[7].mxu0 }
 0x1af   : > { %629 = vst [vmem:[#allocation3] sm:$0xff] %v627_v34  ;;  %v628_v37 = vadd.f32 %v624_v35, %v544_v33 }
 0x1b1   : > { %630 = vst [vmem:[#allocation3 + $0x8] sm:$0xff] %v628_v37 }
 0x1b2 PF: > { %v701_v38 = vld [vmem:[#allocation4] sm:$0xff]  ;;  %v677_v39 = vld [vmem:[#allocation5] sm:$0xff]  ;;  %v1252_v18 = vmov 0   ;;  %v702_v40 = vld [vmem:[#allocation4 + $0x8] sm:$0xff]  ;;  %p674_p9 = scmp.gt.s32.totalorder %s1415_s19, 1  ;;  %s750_s10 = sshll.u32 %s1432_s16, 4  ;;  %s1776_s10 = int_to_ptr.vmem [resolvable:$true] %s750_s10 }
 0x1b3   : > { %1112 = vset.pattern.permute.xlu0 %v1252_v18  ;;  %1113 = vset.pattern.permute.xlu1 %v1252_v18  ;;  %v678_v43 = vld [vmem:[#allocation5 + $0x8] sm:$0xff]  ;;  %v1006_v44 = vld [vmem:[%s257_s8] ss:$0 sm:$0xff]  ;;  %v679_v54 = vld [vmem:[#allocation2] sm:$0xff]  ;;  %s737_s14 = scalar_lea.sflag [#allocation10], %s1405_s24  ;;  %s1160_s15 = scalar_lea.vmem %s1776_s10, 256 }
 0x1b4   : > { %706 = vperm.xlu0 %1112, %v701_v38   ;;  %683 = vperm.xlu1 %1113, %v677_v39   ;;  %s1896_s19 = smov (!%p674_p9, %s1415_s19), 1  ;;  %v680_v62 = vld [vmem:[#allocation2 + $0x8] sm:$0xff]  ;;  %p1161_p2 = scmp.ne.s32.totalorder %s1776_s10, %s1160_s15 }
 0x1b5   : > { %s676_s7 = scvt.s32.f32 %s1896_s19  ;;  %s1015_s19 = sshll.u32 %s1236_s28, 8 }
 0x1b6   : > { %v697_v50 = vld [vmem:[#allocation3] sm:$0xff]  ;;  %s1774_s9 = scalar_lea.hbm %s1830_s4, %s1015_s19  ;;  %p1883_p5 = scmp.ne.s32.totalorder %s1839_s11, 0 }
 0x1b7   : > { %v693_v46 = vstv %s676_s7  ;;  %v699_v53 = vmul.f32 2.0, %v697_v50  ;;  %s1253_s28 = smov [#allocation11]  }
 0x1b8   : > { %711 = vperm.xlu0 %1112, %v702_v40   ;;  %688 = vperm.xlu1 %1113, %v678_v43   ;;  %1114 = vrcp.f32 %v693_v46  ;;  %v698_v55 = vld [vmem:[#allocation3 + $0x8] sm:$0xff]  ;;  %p1162_p8 = pnand %p1161_p2, %p1883_p5  ;;  %s1164_s17 = sshll.u32 %s1253_s28, 4  ;;  %s1165_s17 = int_to_ptr.vmem [resolvable:$false] %s1164_s17 }
 0x1b9   : > { %v722_v56 = vadd.f32 1.0, %v699_v53  ;;  %v700_v60 = vmul.f32 2.0, %v698_v55  ;;  %s1166_s18 = scalar_lea.vmem %s1165_s17, 512  ;;  %p1167_p10 = scmp.lt.s32.totalorder %s1776_s10, %s1165_s17 }
 0x1ba   : > { %p1163_p7 = pneg %p1162_p8  ;;  %p1168_p13 = scmp.lt.s32.totalorder %s1166_s18, %s1160_s15 }
 0x1bb   : > { %v723_v17 = vadd.f32 1.0, %v700_v60 }
 0x1bc   : > { %p1169_p1 = por %p1168_p13, %p1167_p10 }
 0x1be   : > { %p1170_p4 = pnand %p1169_p1, %p1163_p7 }
 0x1c2   : > { %v1115_v14 = vpop.eup %1114 }
 0x233   : > { %v707_v45 = vpop.permute.xlu0 %706  ;;  %v684_v13 = vpop.permute.xlu1 %683 }
 0x234   : > { %v720_v4 = vadd.f32 %v1006_v44, %v707_v45  ;;  %v691_v59 = vsub.f32 %v684_v13, %v679_v54 }
 0x236   : > { %v724_v24 = vadd.f32 1.0, %v720_v4  ;;  %v695_v6 = vmul.f32 %v1115_v14, %v691_v59 }
 0x237   : > { %v712_v47 = vpop.permute.xlu0 %711  ;;  %v689_v2 = vpop.permute.xlu1 %688 }
 0x238   : > { %1116 = vrcp.f32 %v724_v24  ;;  %v721_v48 = vadd.f32 %v1006_v44, %v712_v47  ;;  %v692_v23 = vsub.f32 %v689_v2, %v680_v62 }
 0x23a   : > { %v725_v51 = vadd.f32 1.0, %v721_v48  ;;  %v696_v42 = vmul.f32 %v1115_v14, %v692_v23 }
 0x23c   : > { %1118 = vrcp.f32 %v725_v51 }
 0x242   : > { %v1117_v61 = vpop.eup %1116 }
 0x243   : > { %v727_v3 = vmul.f32 %v1117_v61, %v722_v56 }
 0x245   : > { %v730_v20 = vsub.f32 1.0, %v727_v3 }
 0x246   : > { %v1119_v31 = vpop.eup %1118 }
 0x247   : > { %v732_v32 = vadd.f32 %v730_v20, %v695_v6  ;;  %v729_v19 = vmul.f32 %v1119_v31, %v723_v17 }
 0x249   : > { %734 = vst [vmem:[%s1432_s16] sm:$0xff] %v732_v32  ;;  %v731_v41 = vsub.f32 1.0, %v729_v19 }
 0x24b   : > { %v733_v49 = vadd.f32 %v731_v41, %v696_v42 }
 0x24d   : > { %735 = vst [vmem:[%s1432_s16 + $0x8] sm:$0xff] %v733_v49 }
 0x24e   : > { %1173 = shalt.err (!%p1170_p4)
}
 0x24f   : > { %s1174_s16 = scalar_lea.hbm %s1774_s9, 256  ;;  %s1178_s5 = scalar_lea.hbm %s1830_s4, 512 }
 0x250   : > { %p1175_p6 = scmp.ne.s32.totalorder %s1774_s9, %s1174_s16  ;;  %p1179_p0 = scmp.lt.u32.totalorder %s1774_s9, %s1830_s4 }
 0x251   : > { %p1180_p3 = scmp.lt.u32.totalorder %s1178_s5, %s1174_s16  ;;  %p1182_p2 = scmp.lt.u32.totalorder %s1174_s16, %s1774_s9 }
 0x252   : > { %p1176_p12 = pnand %p1175_p6, %p1883_p5 }
 0x253   : > { %p1181_p9 = por %p1180_p3, %p1179_p0 }
 0x254   : > { %p1177_p11 = pneg %p1176_p12 }
 0x255   : > { %p1183_p8 = por %p1182_p2, %p1181_p9 }
 0x257   : > { %p1184_p7 = pnand %p1183_p8, %p1177_p11 }
 0x259   : > { %1187 = shalt.err (!%p1184_p7)
}
 0x25a   : > { %s1254_s22 = smov 128   ;;  %s1255_s19 = smov 8  }
 0x25b   : > { %1018 = dma.vmem_to_hbm [thread:$0]  (%p1883_p5), %s1776_s10, 256, %s1774_s9, %s737_s14, %s1254_s22, %s1254_s22, %s1255_s19  }
 0x25c PF: > { %s765_s23 = sand.u32 1, %s1224_s25   ;;  %p1884_p10 = scmp.ne.s32.totalorder %s1840_s13, 0 }
 0x25d   : > { %p1885_p13 = scmp.ge.s32.totalorder %s1244_s30, 2  ;;  %s766_s8 = scalar_lea.sflag [#allocation10], %s765_s23 }
 0x25f   : > { %p1025_p1 = pnand %p1885_p13, %p1884_p10 }
 0x261   : > { %1219 = dma.done.wait (!%p1025_p1), %s766_s8, 256  }
 0x262   : > { %1221 = vsyncadd (!%p1025_p1), %s766_s8, 4294967040  ;;  %s24_s30 = sadd.s32 1, %s1244_s30   ;;  %s1886_s25 = smov %s1228_s26 }
 0x263   : > { %p21_p4 = scmp.ge.s32.totalorder %s24_s30, 4   ;;  %s1887_s26 = smov %s1232_s27 }
 0x264   : > { %s1888_s27 = smov %s1349_s12  ;;  %s1889_s28 = smov %s1240_s29 }
 0x265   : > { %s1890_s29 = smov %s1892_s6  ;;  %23 = sbr.rel (!%p21_p4) target bundleno = 18 (0x12), region = 95 }
 0x26c   :  { %771 = vsyncpa [#allocation9], 1 }
 0x26d   :  { %773 = vsyncpa [#allocation9 + $0x1], 1 }
 0x26e   :  { %774 = vsyncpa [#allocation10], 1 }
 0x26f   :  { %776 = vsyncpa [#allocation10 + $0x1], 1 }

</bundles_post_ra>
